<compile_context>
chip_gen: v7x
topology: tpu7x:2x2x1
jax: 0.10.0
libtpu: 0.0.40
codegen_flags: <defaults>
</compile_context>

<pallas_src>
import functools

import jax
import jax.numpy as jnp
from jax.experimental import pallas as pl
from jax.experimental.pallas import tpu as pltpu

# ---- problem sizes (small, consistent with the module's forward) ----
B = 2      # batch
N = 16     # spatial nodes
N_NB = 4   # interpolation / neighbor query points per node
D = 8      # latent dim
H = 32     # aggregator MLP hidden dim


# --------------------------------------------------------------------------
# Shared per-stage RHS body (== DynamicsFunction.forward on the folded batch)
# --------------------------------------------------------------------------
def _rhs_compute(z, phi_ref, bnb_ref, w1z_ref, w1n_ref, b1_ref, w2_ref, b2_ref,
                 *, bn, n_nb, d):
    """z: (B*N, D) f32 value.  Returns dz/dt of shape (B*N, D), f32.

    phi_ref : (N_NB*B*N, B*N)  block-diagonal interpolation weights
    bnb_ref : (N_NB*B*N, D)    interpolation offsets (neighbor-major rows)
    w1z_ref : (D, H)           first-layer weight for the center node
    w1n_ref : (N_NB*D, H)      first-layer weights for the neighbor points
    b1_ref  : (1, H), w2_ref: (H, D), b2_ref: (1, D)
    """
    # hI: single block-diagonal MXU op covering all batches & neighbor points.
    znb = jnp.dot(phi_ref[...], z, preferred_element_type=jnp.float32) + bnb_ref[...]

    # hS layer 1, accumulated directly (no concat scratch, no masked lane stores).
    h_pre = jnp.dot(z, w1z_ref[...], preferred_element_type=jnp.float32) + b1_ref[...]
    for k in range(n_nb):                       # static unroll (N_NB = 4)
        h_pre = h_pre + jnp.dot(znb[k * bn:(k + 1) * bn, :],
                                w1n_ref[k * d:(k + 1) * d, :],
                                preferred_element_type=jnp.float32)

    h = jnp.tanh(h_pre)
    return jnp.dot(h, w2_ref[...], preferred_element_type=jnp.float32) + b2_ref[...]


# --------------------------------------------------------------------------
# Kernel 1: single RHS evaluation (exact module forward)
# --------------------------------------------------------------------------
def rhs_kernel(z_ref, phi_ref, bnb_ref, w1z_ref, w1n_ref, b1_ref, w2_ref, b2_ref,
               o_ref, *, bn, n_nb, d):
    dz = _rhs_compute(z_ref[...].astype(jnp.float32),
                      phi_ref, bnb_ref, w1z_ref, w1n_ref, b1_ref, w2_ref, b2_ref,
                      bn=bn, n_nb=n_nb, d=d)
    o_ref[...] = dz.astype(o_ref.dtype)


# --------------------------------------------------------------------------
# Kernel 2: S fused explicit-Euler stages in ONE pallas_call (grid over stages)
#   - constants stay VMEM-resident across the whole grid (index_map -> (0, 0))
#   - z is carried between stages in a VMEM scratch
# --------------------------------------------------------------------------
def rollout_kernel(z0_ref, phi_ref, bnb_ref, w1z_ref, w1n_ref, b1_ref, w2_ref, b2_ref,
                   zout_ref, zstate, *, dt, bn, n_nb, d):
    s = pl.program_id(0)

    @pl.when(s == 0)
    def _():
        zstate[...] = z0_ref[...].astype(jnp.float32)

    z = zstate[...]
    dz = _rhs_compute(z, phi_ref, bnb_ref, w1z_ref, w1n_ref, b1_ref, w2_ref, b2_ref,
                      bn=bn, n_nb=n_nb, d=d)
    z_new = z + dt * dz
    zstate[...] = z_new
    zout_ref[...] = z_new.astype(zout_ref.dtype)   # block index constant -> one HBM writeback


# --------------------------------------------------------------------------
# One-time precompute (outside the ODE solver's RHS loop)
# --------------------------------------------------------------------------
def precompute_interp_operands(Phi, b):
    """Repack Phi/b ONCE into a block-diagonal, neighbor-major form so that
    the in-kernel interpolation is a single matmul with no per-batch loop."""
    Bb, Nn, n_nb, _ = Phi.shape
    Dd = b.shape[-1]
    eye = jnp.eye(Bb, dtype=Phi.dtype)
    # Phi_bd[k*B*N + b*N + i, b*N + j] = Phi[b, i, k, j]; zero off-diagonal blocks.
    Phi_bd = jnp.einsum('bikj,bc->kbicj', Phi, eye).reshape(n_nb * Bb * Nn, Bb * Nn)
    b_bd = jnp.transpose(b, (2, 0, 1, 3)).reshape(n_nb * Bb * Nn, Dd)
    return Phi_bd, b_bd


def prepare_params(params):
    """One-time weight repack: flatten the neighbor first-layer weights."""
    W1z, W1n, b1, W2, b2 = params
    n_nb, Dd, Hh = W1n.shape
    return W1z, W1n.reshape(n_nb * Dd, Hh), b1, W2, b2


# --------------------------------------------------------------------------
# Wrappers
# --------------------------------------------------------------------------
def dynamics_function(t, z, Phi_bd, b_bd, packed_params):
    """Pallas implementation of DynamicsFunction.forward(t, z, Phi, b)."""
    del t  # unused, as in the original forward
    W1z, W1n_flat, b1, W2, b2 = packed_params
    Bb, Nn, Dd = z.shape
    bn = Bb * Nn
    n_nb = Phi_bd.shape[0] // bn

    z_flat = z.reshape(bn, Dd)                 # free leading-dim collapse
    kernel = functools.partial(rhs_kernel, bn=bn, n_nb=n_nb, d=Dd)
    out_flat = pl.pallas_call(
        kernel,
        out_shape=jax.ShapeDtypeStruct((bn, Dd), z.dtype),
        in_specs=[pl.BlockSpec(memory_space=pltpu.MemorySpace.VMEM)] * 8,
        out_specs=pl.BlockSpec(memory_space=pltpu.MemorySpace.VMEM),
    )(z_flat, Phi_bd, b_bd, W1z, W1n_flat, b1, W2, b2)
    return out_flat.reshape(Bb, Nn, Dd)        # free leading-dim split


def dynamics_euler_rollout(z0, dt, num_steps, Phi_bd, b_bd, packed_params):
    """S fused explicit-Euler steps z <- z + dt * f(t, z, Phi, b) in one
    pallas_call: launch overhead and constant-operand DMA amortized over S."""
    W1z, W1n_flat, b1, W2, b2 = packed_params
    Bb, Nn, Dd = z0.shape
    bn = Bb * Nn
    n_nb = Phi_bd.shape[0] // bn
    z_flat = z0.reshape(bn, Dd)

    def const_spec(shape):
        # Same block every grid step -> DMA'd once, stays VMEM-resident.
        return pl.BlockSpec(shape, lambda s: (0,) * len(shape))

    kernel = functools.partial(rollout_kernel, dt=float(dt), bn=bn, n_nb=n_nb, d=Dd)
    out = pl.pallas_call(
        kernel,
        out_shape=jax.ShapeDtypeStruct((bn, Dd), jnp.float32),
        grid=(num_steps,),
        in_specs=[const_spec(z_flat.shape), const_spec(Phi_bd.shape),
                  const_spec(b_bd.shape), const_spec(W1z.shape),
                  const_spec(W1n_flat.shape), const_spec(b1.shape),
                  const_spec(W2.shape), const_spec(b2.shape)],
        out_specs=const_spec((bn, Dd)),
        scratch_shapes=[pltpu.VMEM((bn, Dd), jnp.float32)],   # carried z state
        compiler_params=pltpu.CompilerParams(dimension_semantics=("arbitrary",)),
    )(z_flat, Phi_bd, b_bd, W1z, W1n_flat, b1, W2, b2)
    return out.reshape(Bb, Nn, Dd)


# --------------------------------------------------------------------------
# Pure-JAX references (exact module semantics)
# --------------------------------------------------------------------------
def reference(t, z, Phi, b, params):
    del t
    W1z, W1n, b1, W2, b2 = params
    Bb, Nn, Dd = z.shape
    n_nb = Phi.shape[2]
    Hh = W1z.shape[1]
    # hI: z_neighb[b,i,k,:] = Phi[b,i,k,:] @ z[b] + b[b,i,k,:]
    z_neighb = jnp.einsum('bikj,bjd->bikd', Phi, z) + b
    # hS: 2-layer tanh MLP over concat(z_i, flatten(z_neighb_i))
    x = jnp.concatenate([z, z_neighb.reshape(Bb, Nn, n_nb * Dd)], axis=-1)
    W1 = jnp.concatenate([W1z, W1n.reshape(n_nb * Dd, Hh)], axis=0)
    h = jnp.tanh(x @ W1 + b1)
    return h @ W2 + b2


def reference_rollout(z0, dt, num_steps, Phi, b, params):
    z = z0
    for _ in range(num_steps):
        z = z + dt * reference(None, z, Phi, b, params)
    return z


if __name__ == "__main__":
    key = jax.random.PRNGKey(0)
    ks = jax.random.split(key, 8)

    # deterministic inputs
    t = jnp.zeros((), jnp.float32)
    z = jax.random.normal(ks[0], (B, N, D), jnp.float32)
    Phi = jax.random.normal(ks[1], (B, N, N_NB, N), jnp.float32) / jnp.sqrt(N)
    b = 0.1 * jax.random.normal(ks[2], (B, N, N_NB, D), jnp.float32)

    # deterministic parameters for hS (2-layer tanh MLP, input = D + N_NB*D)
    W1z = jax.random.normal(ks[3], (D, H), jnp.float32) / jnp.sqrt(D + N_NB * D)
    W1n = jax.random.normal(ks[4], (N_NB, D, H), jnp.float32) / jnp.sqrt(D + N_NB * D)
    b1 = 0.05 * jax.random.normal(ks[5], (1, H), jnp.float32)
    W2 = jax.random.normal(ks[6], (H, D), jnp.float32) / jnp.sqrt(H)
    b2 = 0.05 * jax.random.normal(ks[7], (1, D), jnp.float32)
    params = (W1z, W1n, b1, W2, b2)

    # One-time precompute (sits outside the ODE solver's RHS loop).
    Phi_bd, b_bd = precompute_interp_operands(Phi, b)
    packed = prepare_params(params)

    # --- single RHS evaluation: exact module forward ---
    out = dynamics_function(t, z, Phi_bd, b_bd, packed)
    out = jax.block_until_ready(out)
    ref = reference(t, z, Phi, b, params)
    assert out.shape == (B, N, D)
    assert jnp.allclose(out, ref, rtol=1e-5, atol=1e-5), "mismatch vs reference (single RHS)"

    # --- fused multi-stage rollout: one pallas_call, constants DMA'd once ---
    dt, steps = 0.05, 8
    z_roll = dynamics_euler_rollout(z, dt, steps, Phi_bd, b_bd, packed)
    z_roll = jax.block_until_ready(z_roll)
    z_roll_ref = reference_rollout(z, dt, steps, Phi, b, params)
    assert z_roll.shape == (B, N, D)
    assert jnp.allclose(z_roll, z_roll_ref, rtol=1e-4, atol=1e-4), \
        "mismatch vs reference (fused Euler rollout)"

    print("KERNEL_OK")
</pallas_src>

<mosaic_0001>
module attributes {stable_mosaic.version = 11 : i64} {
  func.func @rhs_kernel(%arg0: memref<32x8xf32, #tpu.memory_space<vmem>>, %arg1: memref<128x32xf32, #tpu.memory_space<vmem>>, %arg2: memref<128x8xf32, #tpu.memory_space<vmem>>, %arg3: memref<8x32xf32, #tpu.memory_space<vmem>>, %arg4: memref<32x32xf32, #tpu.memory_space<vmem>>, %arg5: memref<1x32xf32, #tpu.memory_space<vmem>>, %arg6: memref<32x8xf32, #tpu.memory_space<vmem>>, %arg7: memref<1x8xf32, #tpu.memory_space<vmem>>, %arg8: memref<32x8xf32, #tpu.memory_space<vmem>>) attributes {dimension_semantics = [], scalar_prefetch = 0 : i64, scratch_operands = 0 : i64, tpu.core_type = #tpu.core_type<tc>} {
    %c0 = arith.constant 0 : index
    %c0_0 = arith.constant 0 : index
    %0 = vector.load %arg0[%c0, %c0_0] : memref<32x8xf32, #tpu.memory_space<vmem>>, vector<32x8xf32>
    %c0_1 = arith.constant 0 : index
    %c0_2 = arith.constant 0 : index
    %1 = vector.load %arg1[%c0_1, %c0_2] : memref<128x32xf32, #tpu.memory_space<vmem>>, vector<128x32xf32>
    %cst = arith.constant dense<0.000000e+00> : vector<128x8xf32>
    %2 = tpu.matmul %1, %0, %cst {dimension_numbers = #tpu.dot_dimension_numbers<[1], [0], [0], [1], [0, 0, 1, 1], [], []>} : vector<128x32xf32>, vector<32x8xf32>, vector<128x8xf32> -> vector<128x8xf32>
    %c0_3 = arith.constant 0 : index
    %c0_4 = arith.constant 0 : index
    %3 = vector.load %arg2[%c0_3, %c0_4] : memref<128x8xf32, #tpu.memory_space<vmem>>, vector<128x8xf32>
    %4 = arith.addf %2, %3 : vector<128x8xf32>
    %c0_5 = arith.constant 0 : index
    %c0_6 = arith.constant 0 : index
    %5 = vector.load %arg3[%c0_5, %c0_6] : memref<8x32xf32, #tpu.memory_space<vmem>>, vector<8x32xf32>
    %cst_7 = arith.constant dense<0.000000e+00> : vector<32x32xf32>
    %6 = tpu.matmul %0, %5, %cst_7 {dimension_numbers = #tpu.dot_dimension_numbers<[1], [0], [0], [1], [0, 0, 1, 1], [], []>} : vector<32x8xf32>, vector<8x32xf32>, vector<32x32xf32> -> vector<32x32xf32>
    %c0_8 = arith.constant 0 : index
    %c0_9 = arith.constant 0 : index
    %7 = vector.load %arg5[%c0_8, %c0_9] : memref<1x32xf32, #tpu.memory_space<vmem>>, vector<1x32xf32>
    %8 = vector.broadcast %7 : vector<1x32xf32> to vector<32x32xf32>
    %9 = arith.addf %6, %8 : vector<32x32xf32>
    %10 = vector.extract_strided_slice %4 {offsets = [0, 0], sizes = [32, 8], strides = [1, 1]} : vector<128x8xf32> to vector<32x8xf32>
    %c0_10 = arith.constant 0 : index
    %c0_11 = arith.constant 0 : index
    %11 = vector.load %arg4[%c0_10, %c0_11] : memref<32x32xf32, #tpu.memory_space<vmem>>, vector<8x32xf32>
    %cst_12 = arith.constant dense<0.000000e+00> : vector<32x32xf32>
    %12 = tpu.matmul %10, %11, %cst_12 {dimension_numbers = #tpu.dot_dimension_numbers<[1], [0], [0], [1], [0, 0, 1, 1], [], []>} : vector<32x8xf32>, vector<8x32xf32>, vector<32x32xf32> -> vector<32x32xf32>
    %13 = arith.addf %9, %12 : vector<32x32xf32>
    %14 = vector.extract_strided_slice %4 {offsets = [32, 0], sizes = [32, 8], strides = [1, 1]} : vector<128x8xf32> to vector<32x8xf32>
    %c8 = arith.constant 8 : index
    %c0_13 = arith.constant 0 : index
    %15 = vector.load %arg4[%c8, %c0_13] : memref<32x32xf32, #tpu.memory_space<vmem>>, vector<8x32xf32>
    %cst_14 = arith.constant dense<0.000000e+00> : vector<32x32xf32>
    %16 = tpu.matmul %14, %15, %cst_14 {dimension_numbers = #tpu.dot_dimension_numbers<[1], [0], [0], [1], [0, 0, 1, 1], [], []>} : vector<32x8xf32>, vector<8x32xf32>, vector<32x32xf32> -> vector<32x32xf32>
    %17 = arith.addf %13, %16 : vector<32x32xf32>
    %18 = vector.extract_strided_slice %4 {offsets = [64, 0], sizes = [32, 8], strides = [1, 1]} : vector<128x8xf32> to vector<32x8xf32>
    %c16 = arith.constant 16 : index
    %c0_15 = arith.constant 0 : index
    %19 = vector.load %arg4[%c16, %c0_15] : memref<32x32xf32, #tpu.memory_space<vmem>>, vector<8x32xf32>
    %cst_16 = arith.constant dense<0.000000e+00> : vector<32x32xf32>
    %20 = tpu.matmul %18, %19, %cst_16 {dimension_numbers = #tpu.dot_dimension_numbers<[1], [0], [0], [1], [0, 0, 1, 1], [], []>} : vector<32x8xf32>, vector<8x32xf32>, vector<32x32xf32> -> vector<32x32xf32>
    %21 = arith.addf %17, %20 : vector<32x32xf32>
    %22 = vector.extract_strided_slice %4 {offsets = [96, 0], sizes = [32, 8], strides = [1, 1]} : vector<128x8xf32> to vector<32x8xf32>
    %c24 = arith.constant 24 : index
    %c0_17 = arith.constant 0 : index
    %23 = vector.load %arg4[%c24, %c0_17] : memref<32x32xf32, #tpu.memory_space<vmem>>, vector<8x32xf32>
    %cst_18 = arith.constant dense<0.000000e+00> : vector<32x32xf32>
    %24 = tpu.matmul %22, %23, %cst_18 {dimension_numbers = #tpu.dot_dimension_numbers<[1], [0], [0], [1], [0, 0, 1, 1], [], []>} : vector<32x8xf32>, vector<8x32xf32>, vector<32x32xf32> -> vector<32x32xf32>
    %25 = arith.addf %21, %24 : vector<32x32xf32>
    %26 = math.tanh %25 : vector<32x32xf32>
    %c0_19 = arith.constant 0 : index
    %c0_20 = arith.constant 0 : index
    %27 = vector.load %arg6[%c0_19, %c0_20] : memref<32x8xf32, #tpu.memory_space<vmem>>, vector<32x8xf32>
    %cst_21 = arith.constant dense<0.000000e+00> : vector<32x8xf32>
    %28 = tpu.matmul %26, %27, %cst_21 {dimension_numbers = #tpu.dot_dimension_numbers<[1], [0], [0], [1], [0, 0, 1, 1], [], []>} : vector<32x32xf32>, vector<32x8xf32>, vector<32x8xf32> -> vector<32x8xf32>
    %c0_22 = arith.constant 0 : index
    %c0_23 = arith.constant 0 : index
    %29 = vector.load %arg7[%c0_22, %c0_23] : memref<1x8xf32, #tpu.memory_space<vmem>>, vector<1x8xf32>
    %30 = vector.broadcast %29 : vector<1x8xf32> to vector<32x8xf32>
    %31 = arith.addf %28, %30 : vector<32x8xf32>
    %c0_24 = arith.constant 0 : index
    %c0_25 = arith.constant 0 : index
    %32 = vector.load %arg8[%c0_24, %c0_25] : memref<32x8xf32, #tpu.memory_space<vmem>>, vector<32x8xf32>
    tpu.vector_store %arg8[%c0_24, %c0_25], %31 {strides = array<i32>} : memref<32x8xf32, #tpu.memory_space<vmem>>, vector<32x8xf32>,
    return
  }
}

</mosaic_0001>

<bundles_post_ra>
// kernel: tpu_custom_call.1
= control target key start
LH: loop header
LB: loop body
LE: loop exit
PB: predicated region body
PF: predicated region fallthrough
CT: control target
= control target key end

     0   :  { %vm65_vm0 = vcmask 261120   ;;  %vm267_vm1 = vcmask 64512   ;;  %s1370_s0 = inlined_call_operand.vmem [shape: f32[32,8], index: 0, kind: input, shape index: {}]   ;;  %s1371_s1 = inlined_call_operand.vmem [shape: f32[128,32], index: 1, kind: input, shape index: {}]   ;;  %s1372_s3 = inlined_call_operand.vmem [shape: f32[8,32], index: 3, kind: input, shape index: {}]   ;;  %s1373_s4 = inlined_call_operand.vmem [shape: f32[32,32], index: 4, kind: input, shape index: {}]   ;;  %s1374_s6 = inlined_call_operand.vmem [shape: f32[32,8], index: 6, kind: input, shape index: {}]   ;;  %s1375_s2 = inlined_call_operand.vmem [shape: f32[128,8], index: 2, kind: input, shape index: {}]   ;;  %s1376_s5 = inlined_call_operand.vmem [shape: f32[1,32], index: 5, kind: input, shape index: {}]   ;;  %s1377_s7 = inlined_call_operand.vmem [shape: f32[1,8], index: 7, kind: input, shape index: {}]   ;;  %s1378_s8 = inlined_call_operand.vmem [shape: f32[32,8], index: 8, kind: output, shape index: {}]  }
   0x1   :  { %v29_v0 = vld [vmem:[%s1370_s0] sm:$0xff]  ;;  %v30_v1 = vld [vmem:[%s1370_s0 + $0x8] sm:$0xff]  ;;  %v31_v2 = vld [vmem:[%s1370_s0 + $0x10] sm:$0xff] }
   0x2   :  { %v1074_v3 = vpack.c.bf16 %v30_v1, %v29_v0  ;;  %v32_v4 = vld [vmem:[%s1370_s0 + $0x18] sm:$0xff]  ;;  %v33_v5 = vld [vmem:[%s1371_s1] sm:$0xff]  ;;  %1022 = vmatprep.mubr.msk.f32.mxu1 %vm267_vm1, %v29_v0  ;;  %v34_v9 = vld [vmem:[%s1371_s1 + $0x8] sm:$0xff] }
   0x3   :  { %v1078_v6 = vpack.c.bf16 %v32_v4, %v31_v2  ;;  %996 = vmatprep.mubr.msk.f32.mxu0 %vm65_vm0, %v33_v5  ;;  %v259_v7 = vld [vmem:[%s1372_s3] sm:$0xff]  ;;  %v35_v10 = vld [vmem:[%s1371_s1 + $0x10] sm:$0xff]  ;;  %v36_v11 = vld [vmem:[%s1371_s1 + $0x18] sm:$0xff] }
   0x4   :  { %1075 = vmatprep.subr.bf16.mxu0 %v1074_v3  ;;  %1020 = vmatprep.subr.mxu1 %v259_v7  ;;  %v365_v8 = vld [vmem:[%s1373_s4] sm:$0xff]  ;;  %v38_v13 = vld [vmem:[%s1371_s1 + $0x28] sm:$0xff]  ;;  %v39_v14 = vld [vmem:[%s1371_s1 + $0x30] sm:$0xff] }
   0x5   :  { %1077 = vmatpush3.bf16.msra.mxu0 %v1074_v3  ;;  %1021 = vmatpush3.msra.mxu1 %v259_v7  ;;  %v37_v12 = vld [vmem:[%s1371_s1 + $0x20] sm:$0xff]  ;;  %v40_v15 = vld [vmem:[%s1371_s1 + $0x38] sm:$0xff]  ;;  %v42_v17 = vld [vmem:[%s1371_s1 + $0x48] sm:$0xff] }
   0x6   :  { %1079 = vmatprep.subr.bf16.mxu0 %v1078_v6  ;;  %1028 = vmatprep.subr.mxu1 %v365_v8  ;;  %v41_v16 = vld [vmem:[%s1371_s1 + $0x40] sm:$0xff]  ;;  %v43_v18 = vld [vmem:[%s1371_s1 + $0x50] sm:$0xff]  ;;  %v44_v19 = vld [vmem:[%s1371_s1 + $0x58] sm:$0xff] }
   0x7   :  { %1023 = vmatmul.mubr.msk.f32.vlgmr.msra.gmra.mrb[0].mxu1 %vm267_vm1, %v30_v1  ;;  %v45_v20 = vld [vmem:[%s1371_s1 + $0x60] sm:$0xff]  ;;  %v46_v21 = vld [vmem:[%s1371_s1 + $0x68] sm:$0xff]  ;;  %v47_v22 = vld [vmem:[%s1371_s1 + $0x70] sm:$0xff] }
   0x8   :  { %1029 = vmatpush3.msra.mxu1 %v365_v8  ;;  %1025 = vmatprep.mubr.msk.f32.mxu1 %vm267_vm1, %v31_v2  ;;  %v48_v23 = vld [vmem:[%s1371_s1 + $0x78] sm:$0xff]  ;;  %v467_v24 = vld [vmem:[%s1373_s4 + $0x8] sm:$0xff]  ;;  %v777_v25 = vld [vmem:[%s1374_s6] sm:$0xff] }
   0x9   :  { %1081 = vmatpush3.bf16.msra.mxu0 %v1078_v6  ;;  %1036 = vmatprep.subr.mxu1 %v467_v24  ;;  %v778_v26 = vld [vmem:[%s1374_s6 + $0x8] sm:$0xff]  ;;  %v49_v28 = vld [vmem:[%s1375_s2] sm:$0xff]  ;;  %v51_v34 = vld [vmem:[%s1375_s2 + $0x10] sm:$0xff] }
   0xa   :  { %v1262_v27 = vpack.c.bf16 %v778_v26, %v777_v25  ;;  %v50_v29 = vld [vmem:[%s1375_s2 + $0x8] sm:$0xff]  ;;  %v52_v35 = vld [vmem:[%s1375_s2 + $0x18] sm:$0xff]  ;;  %v569_v37 = vld [vmem:[%s1373_s4 + $0x10] sm:$0xff] }
   0xb   :  { %1026 = vmatmul.mubr.msk.f32.gmra.mrb[2].mxu1 %vm267_vm1, %v32_v4  ;;  %v53_v41 = vld [vmem:[%s1375_s2 + $0x20] sm:$0xff]  ;;  %v54_v42 = vld [vmem:[%s1375_s2 + $0x28] sm:$0xff]  ;;  %v55_v47 = vld [vmem:[%s1375_s2 + $0x30] sm:$0xff] }
   0xc   :  { %997 = vmatmul.mubr.msk.f32.vlgmr.msra.gmra.mrb[0].mxu0 %vm65_vm0, %v34_v9  ;;  %1083 = vmatprep.subr.bf16.mxu0 %v1262_v27  ;;  %v56_v48 = vld [vmem:[%s1375_s2 + $0x38] sm:$0xff]  ;;  %v57_v54 = vld [vmem:[%s1375_s2 + $0x40] sm:$0xff]  ;;  %v58_v55 = vld [vmem:[%s1375_s2 + $0x48] sm:$0xff] }
   0xd   :  { %999 = vmatprep.mubr.msk.f32.mxu0 %vm65_vm0, %v35_v10  ;;  %1085 = vmatpush3.bf16.msra.mxu0 %v1262_v27  ;;  %v671_v50 = vld [vmem:[%s1373_s4 + $0x18] sm:$0xff]  ;;  %v59_v60 = vld [vmem:[%s1375_s2 + $0x50] sm:$0xff]  ;;  %v61_v2 = vld [vmem:[%s1375_s2 + $0x60] sm:$0xff] }
   0xe   :  { %v60_v61 = vld [vmem:[%s1375_s2 + $0x58] sm:$0xff]  ;;  %v62_v3 = vld [vmem:[%s1375_s2 + $0x68] sm:$0xff]  ;;  %v63_v8 = vld [vmem:[%s1375_s2 + $0x70] sm:$0xff] }
   0xf   :  { %v64_v9 = vld [vmem:[%s1375_s2 + $0x78] sm:$0xff] }
  0x10   :  { %1000 = vmatmul.mubr.msk.f32.gmra.mrb[2].mxu0 %vm65_vm0, %v36_v11 }
  0x11   :  { %1002 = vmatprep.mubr.msk.f32.mxu0 %vm65_vm0, %v37_v12 }
  0x14   :  { %1003 = vmatmul.mubr.msk.f32.gmra.mrb[4].mxu0 %vm65_vm0, %v38_v13 }
  0x15   :  { %1005 = vmatprep.mubr.msk.f32.mxu0 %vm65_vm0, %v39_v14  ;;  %v779_v14 = vld [vmem:[%s1374_s6 + $0x10] sm:$0xff] }
  0x18   :  { %1006 = vmatmul.mubr.msk.f32.gmra.mrb[6].mxu0 %vm65_vm0, %v40_v15  ;;  %v780_v15 = vld [vmem:[%s1374_s6 + $0x18] sm:$0xff] }
  0x19   :  { %1008 = vmatprep.mubr.msk.f32.mxu0 %vm65_vm0, %v41_v16  ;;  %v1086_v16 = vpack.c.bf16 %v780_v15, %v779_v14 }
  0x1b   :  { %1087 = vmatprep.subr.bf16.mxu0 %v1086_v16 }
  0x1c   :  { %1009 = vmatmul.mubr.msk.f32.gmra.mrb[8].mxu0 %vm65_vm0, %v42_v17  ;;  %v909_v17 = vld [vmem:[%s1376_s5] ss:$0 sm:$0xff] }
  0x1d   :  { %1011 = vmatprep.mubr.msk.f32.mxu0 %vm65_vm0, %v43_v18  ;;  %1089 = vmatpush3.bf16.msra.mxu0 %v1086_v16 }
  0x20   :  { %1012 = vmatmul.mubr.msk.f32.gmra.mrb[10].mxu0 %vm65_vm0, %v44_v19 }
  0x21   :  { %1014 = vmatprep.mubr.msk.f32.mxu0 %vm65_vm0, %v45_v20 }
  0x24   :  { %1015 = vmatmul.mubr.msk.f32.gmra.mrb[12].mxu0 %vm65_vm0, %v46_v21 }
  0x25   :  { %1017 = vmatprep.mubr.msk.f32.mxu0 %vm65_vm0, %v47_v22 }
  0x28   :  { %1018 = vmatmul.mubr.msk.f32.gmra.mrb[14].mxu0 %vm65_vm0, %v48_v23 }
  0xdf   :  { %v998_v30 = vpop.f32.mrb[0].mxu0 }
  0xe0   :  { %v180_v31 = vpop.f32.mrb[1].mxu0  ;;  %v186_v33 = vadd.f32 %v998_v30, %v50_v29  ;;  %v930_v30 = vld [vmem:[%s1377_s7] ss:$0 sm:$0xff] }
  0xe1   :  { %v181_v32 = vadd.f32 %v180_v31, %v49_v28 }
  0xe3   :  { %v1001_v36 = vpop.f32.mrb[2].mxu0  ;;  %1030 = vmatprep.mubr.msk.f32.mxu1 %vm267_vm1, %v181_v32 }
  0xe4   :  { %v190_v38 = vpop.f32.mrb[3].mxu0  ;;  %1031 = vmatmul.mubr.msk.f32.vlgmr.msra.gmra.mrb[0].mxu1 %vm267_vm1, %v186_v33  ;;  %v196_v40 = vadd.f32 %v1001_v36, %v52_v35 }
  0xe5   :  { %v191_v39 = vadd.f32 %v190_v38, %v51_v34  ;;  %1037 = vmatpush3.msra.mxu1 %v467_v24 }
  0xe6   :  { %1044 = vmatprep.subr.mxu1 %v569_v37 }
  0xe7   :  { %v1004_v43 = vpop.f32.mrb[4].mxu0  ;;  %1033 = vmatprep.mubr.msk.f32.mxu1 %vm267_vm1, %v191_v39 }
  0xe8   :  { %v200_v44 = vpop.f32.mrb[5].mxu0  ;;  %1034 = vmatmul.mubr.msk.f32.gmra.mrb[2].mxu1 %vm267_vm1, %v196_v40  ;;  %v206_v46 = vadd.f32 %v1004_v43, %v54_v42 }
  0xe9   :  { %v201_v45 = vadd.f32 %v200_v44, %v53_v41 }
  0xeb   :  { %v1007_v49 = vpop.f32.mrb[6].mxu0  ;;  %1038 = vmatprep.mubr.msk.f32.mxu1 %vm267_vm1, %v201_v45 }
  0xec   :  { %v210_v51 = vpop.f32.mrb[7].mxu0  ;;  %1039 = vmatmul.mubr.msk.f32.vlgmr.msra.gmra.mrb[0].mxu1 %vm267_vm1, %v206_v46  ;;  %v216_v53 = vadd.f32 %v1007_v49, %v56_v48 }
  0xed   :  { %v211_v52 = vadd.f32 %v210_v51, %v55_v47  ;;  %1045 = vmatpush3.msra.mxu1 %v569_v37 }
  0xee   :  { %1052 = vmatprep.subr.mxu1 %v671_v50 }
  0xef   :  { %v1010_v56 = vpop.f32.mrb[8].mxu0  ;;  %1041 = vmatprep.mubr.msk.f32.mxu1 %vm267_vm1, %v211_v52 }
  0xf0   :  { %v220_v57 = vpop.f32.mrb[9].mxu0  ;;  %1042 = vmatmul.mubr.msk.f32.gmra.mrb[2].mxu1 %vm267_vm1, %v216_v53  ;;  %v226_v59 = vadd.f32 %v1010_v56, %v58_v55 }
  0xf1   :  { %v221_v58 = vadd.f32 %v220_v57, %v57_v54 }
  0xf3   :  { %v1013_v62 = vpop.f32.mrb[10].mxu0  ;;  %1046 = vmatprep.mubr.msk.f32.mxu1 %vm267_vm1, %v221_v58 }
  0xf4   :  { %v230_v63 = vpop.f32.mrb[11].mxu0  ;;  %1047 = vmatmul.mubr.msk.f32.vlgmr.msra.gmra.mrb[0].mxu1 %vm267_vm1, %v226_v59  ;;  %v236_v1 = vadd.f32 %v1013_v62, %v60_v61 }
  0xf5   :  { %v231_v0 = vadd.f32 %v230_v63, %v59_v60  ;;  %1053 = vmatpush3.msra.mxu1 %v671_v50 }
  0xf6   :  { %1090 = vmatprep.subr.bf16.mxu1 %v1262_v27 }
  0xf7   :  { %v1016_v4 = vpop.f32.mrb[12].mxu0  ;;  %1049 = vmatprep.mubr.msk.f32.mxu1 %vm267_vm1, %v231_v0 }
  0xf8   :  { %v240_v5 = vpop.f32.mrb[13].mxu0  ;;  %1050 = vmatmul.mubr.msk.f32.gmra.mrb[2].mxu1 %vm267_vm1, %v236_v1  ;;  %v246_v7 = vadd.f32 %v1016_v4, %v62_v3 }
  0xf9   :  { %v241_v6 = vadd.f32 %v240_v5, %v61_v2 }
  0xfb   :  { %v1019_v10 = vpop.f32.mrb[14].mxu0  ;;  %1054 = vmatprep.mubr.msk.f32.mxu1 %vm267_vm1, %v241_v6 }
  0xfc   :  { %v250_v11 = vpop.f32.mrb[15].mxu0  ;;  %1055 = vmatmul.mubr.msk.f32.vlgmr.msra.gmra.mrb[0].mxu1 %vm267_vm1, %v246_v7  ;;  %v256_v13 = vadd.f32 %v1019_v10, %v64_v9 }
  0xfd   :  { %v251_v12 = vadd.f32 %v250_v11, %v63_v8  ;;  %1092 = vmatpush3.bf16.msra.mxu1 %v1262_v27 }
  0xfe   :  { %1091 = vmatprep.subr.bf16.mxu1 %v1086_v16 }
  0xff   :  { %1057 = vmatprep.mubr.msk.f32.mxu1 %vm267_vm1, %v251_v12 }
 0x100   :  { %1058 = vmatmul.mubr.msk.f32.gmra.mrb[2].mxu1 %vm267_vm1, %v256_v13 }
 0x101   :  { %1093 = vmatpush3.bf16.msra.mxu1 %v1086_v16 }
 0x1cf   :  { %v1056_v18 = vpop.f32.mrb[0].mxu1 }
 0x1d0   :  { %v1094_v19 = vadd.f32 %v1056_v18, %v909_v17  ;;  %v750_v20 = vpop.f32.mrb[1].mxu1 }
 0x1d1   :  { %v1095_v21 = vadd.f32 %v909_v17, %v750_v20 }
 0x1d3   :  { %1114 = vtanh.f32 %v1095_v21  ;;  %v1059_v22 = vpop.f32.mrb[2].mxu1 }
 0x1d4   :  { %1116 = vtanh.f32 %v1094_v19  ;;  %v1096_v23 = vadd.f32 %v1059_v22, %v909_v17  ;;  %v760_v24 = vpop.f32.mrb[3].mxu1 }
 0x1d5   :  { %v1097_v25 = vadd.f32 %v909_v17, %v760_v24 }
 0x1d7   :  { %1118 = vtanh.f32 %v1097_v25 }
 0x1d8   :  { %1120 = vtanh.f32 %v1096_v23 }
 0x1dd   :  { %v1115_v26 = vpop.eup %1114 }
 0x1de   :  { %v1117_v27 = vpop.eup %1116  ;;  %1068 = vmatprep.mubr.msk.f32.mxu0 %vm65_vm0, %v1115_v26 }
 0x1df   :  { %1069 = vmatmul.mubr.msk.f32.vlgmr.msra.gmra.mrb[16].mxu0 %vm65_vm0, %v1117_v27 }
 0x1e1   :  { %v1119_v28 = vpop.eup %1118 }
 0x1e2   :  { %v1121_v29 = vpop.eup %1120  ;;  %1071 = vmatprep.mubr.msk.f32.mxu1 %vm65_vm0, %v1119_v28 }
 0x1e3   :  { %1072 = vmatmul.mubr.msk.f32.vlgmr.msra.gmra.mrb[4].mxu1 %vm65_vm0, %v1121_v29 }
 0x2b2   :  { %v1070_v31 = vpop.f32.mrb[16].mxu0 }
 0x2b3   :  { %v872_v32 = vadd.f32 %v1070_v31, %v930_v30  ;;  %v866_v33 = vpop.f32.mrb[17].mxu0 }
 0x2b4   :  { %v867_v34 = vadd.f32 %v930_v30, %v866_v33 }
 0x2b5   :  { %886 = vst.msk [vmem:[%s1378_s8 + $0x8] sm:$0xff] %vm267_vm1, %v872_v32 }
 0x2b6   :  { %885 = vst.msk [vmem:[%s1378_s8] sm:$0xff] %vm267_vm1, %v867_v34  ;;  %v1073_v35 = vpop.f32.mrb[4].mxu1 }
 0x2b7   :  { %v882_v36 = vadd.f32 %v1073_v35, %v930_v30  ;;  %v876_v37 = vpop.f32.mrb[5].mxu1 }
 0x2b8   :  { %v877_v38 = vadd.f32 %v930_v30, %v876_v37 }
 0x2b9   :  { %888 = vst.msk [vmem:[%s1378_s8 + $0x18] sm:$0xff] %vm267_vm1, %v882_v36 }
 0x2ba   :  { %887 = vst.msk [vmem:[%s1378_s8 + $0x10] sm:$0xff] %vm267_vm1, %v877_v38 }

</bundles_post_ra>
